<compile_context>
chip_gen: v6e
topology: v6e:2x2x1
jax: 0.10.0
libtpu: 0.0.40
codegen_flags: <defaults>
</compile_context>

<pallas_src>
import jax
import jax.numpy as jnp
from jax.experimental import pallas as pl
from jax.experimental.pallas import tpu as pltpu

HIDDEN = 16


def _round_up(n, m):
    return ((n + m - 1) // m) * m


def xornet_kernel(x_ref, w1_ref, b1_ref, w2_ref, b2_ref, o_ref):
    # x_ref: (2, TR, 128) VMEM; w1_ref: (32,) SMEM; b1_ref: (16,) SMEM;
    # w2_ref: (16,) SMEM; b2_ref: (1,) SMEM; o_ref: (TR, 128) VMEM.
    x0 = x_ref[0]                                   # (TR, 128) feature 0
    x1 = x_ref[1]                                   # (TR, 128) feature 1
    acc = jnp.full(x0.shape, b2_ref[0], dtype=jnp.float32)
    # Fully unrolled over the 16 hidden units: scalar(SMEM) * vector MACs on
    # the VPU, ReLU, then accumulate w2[j] * h_j into one (TR, 128) tile.
    for j in range(HIDDEN):
        h = jnp.maximum(w1_ref[2 * j] * x0 + w1_ref[2 * j + 1] * x1 + b1_ref[j], 0.0)
        acc = acc + w2_ref[j] * h
    o_ref[...] = acc.astype(o_ref.dtype)


def xornet_forward(x, w1, b1, w2, b2, *, max_tile_rows=512):
    """x: (B, 2) f32; params in PyTorch layout: w1 (16,2), b1 (16,), w2 (1,16), b2 (1,)."""
    B = x.shape[0]
    padded_B = _round_up(B, 1024)                   # 8 sublanes * 128 lanes granularity
    R = padded_B // 128                             # rows of 128 samples (multiple of 8)

    # Tile rows: as large as allowed, but keep >=4 parallel grid steps for big B
    # (v7x: 2 TensorCores).  Padding is NOT rounded up to the tile — grid = cdiv.
    TR = max(8, min(max_tile_rows, _round_up(pl.cdiv(R, 4), 8)))
    grid = (pl.cdiv(R, TR),)

    # Batch-on-lanes(+sublanes) layout: (2, R, 128).
    # TODO(synk): if the upstream producer can emit x already as (2, B) /
    # (2, R, 128), skip this pad+transpose — it is one extra HBM pass outside
    # the kernel.
    xt = jnp.pad(x, ((0, padded_B - B), (0, 0))).T.reshape(2, R, 128)

    out = pl.pallas_call(
        xornet_kernel,
        out_shape=jax.ShapeDtypeStruct((R, 128), jnp.float32),
        grid=grid,
        in_specs=[
            pl.BlockSpec((2, TR, 128), lambda i: (0, i, 0)),            # x tile
            pl.BlockSpec(memory_space=pltpu.MemorySpace.SMEM),          # w1 flat (32,)
            pl.BlockSpec(memory_space=pltpu.MemorySpace.SMEM),          # b1 (16,)
            pl.BlockSpec(memory_space=pltpu.MemorySpace.SMEM),          # w2 flat (16,)
            pl.BlockSpec(memory_space=pltpu.MemorySpace.SMEM),          # b2 (1,)
        ],
        out_specs=pl.BlockSpec((TR, 128), lambda i: (i, 0)),            # dense output tile
        compiler_params=pltpu.CompilerParams(
            dimension_semantics=("parallel",),      # shard batch tiles across v7x's 2 TCs
        ),
        cost_estimate=pl.CostEstimate(
            flops=112 * padded_B,                   # ~7 VPU ops/hidden unit/sample
            transcendentals=0,
            bytes_accessed=12 * padded_B,           # 8 B in + 4 B out per sample
        ),
    )(xt, w1.reshape(-1), b1, w2.reshape(-1), b2)

    # (R, 128) row-major == sample order; slice off padding, reshape to (B, 1).
    return out.reshape(padded_B)[:B].reshape(B, 1)


def init_params(key):
    """Deterministic init mirroring nn.Linear's U(-1/sqrt(fan_in), +) in PyTorch layout."""
    k1, k2, k3, k4 = jax.random.split(key, 4)
    bound1 = 1.0 / jnp.sqrt(2.0)     # hidden: fan_in = 2
    bound2 = 1.0 / jnp.sqrt(16.0)    # output: fan_in = 16
    w1 = jax.random.uniform(k1, (HIDDEN, 2), jnp.float32, -bound1, bound1)
    b1 = jax.random.uniform(k2, (HIDDEN,), jnp.float32, -bound1, bound1)
    w2 = jax.random.uniform(k3, (1, HIDDEN), jnp.float32, -bound2, bound2)
    b2 = jax.random.uniform(k4, (1,), jnp.float32, -bound2, bound2)
    return w1, b1, w2, b2


if __name__ == "__main__":
    key = jax.random.PRNGKey(0)
    kx, kp = jax.random.split(key)

    B = 8  # XOR-style inputs are (B, 2); perf-relevant sizes are B >= 64K.
    x = jax.random.uniform(kx, (B, 2), jnp.float32)
    w1, b1, w2, b2 = init_params(kp)

    fwd = jax.jit(xornet_forward)
    out = jax.block_until_ready(fwd(x, w1, b1, w2, b2))

    # Pure-JAX reference of the same forward pass (PyTorch param layout).
    ref = jnp.maximum(x @ w1.T + b1, 0.0) @ w2.T + b2
    assert out.shape == (B, 1)
    assert jnp.allclose(out, ref, atol=1e-5, rtol=1e-5)

    print("KERNEL_OK")
</pallas_src>

<mosaic_0001>
module attributes {stable_mosaic.version = 11 : i64} {
  func.func @xornet_kernel(%arg0: i32, %arg1: memref<2x8x128xf32, #tpu.memory_space<vmem>>, %arg2: memref<32xf32, #tpu.memory_space<smem>>, %arg3: memref<16xf32, #tpu.memory_space<smem>>, %arg4: memref<16xf32, #tpu.memory_space<smem>>, %arg5: memref<1xf32, #tpu.memory_space<smem>>, %arg6: memref<8x128xf32, #tpu.memory_space<vmem>>) attributes {dimension_semantics = [#tpu.dimension_semantics<parallel>], iteration_bounds = array<i64: 1>, scalar_prefetch = 0 : i64, scratch_operands = 0 : i64, tpu.core_type = #tpu.core_type<tc>, window_params = [{transform_indices = @transform_0, window_bounds = array<i64: 2, 8, 128>}, {transform_indices = @transform_1, window_bounds = array<i64: 32>}, {transform_indices = @transform_2, window_bounds = array<i64: 16>}, {transform_indices = @transform_3, window_bounds = array<i64: 16>}, {transform_indices = @transform_4, window_bounds = array<i64: 1>}, {transform_indices = @transform_5, window_bounds = array<i64: 8, 128>}]} {
    %c0 = arith.constant 0 : index
    %c0_0 = arith.constant 0 : index
    %c0_1 = arith.constant 0 : index
    %0 = vector.load %arg1[%c0, %c0_0, %c0_1] : memref<2x8x128xf32, #tpu.memory_space<vmem>>, vector<1x8x128xf32>
    %1 = vector.shape_cast %0 : vector<1x8x128xf32> to vector<8x128xf32>
    %c1 = arith.constant 1 : index
    %c0_2 = arith.constant 0 : index
    %c0_3 = arith.constant 0 : index
    %2 = vector.load %arg1[%c1, %c0_2, %c0_3] : memref<2x8x128xf32, #tpu.memory_space<vmem>>, vector<1x8x128xf32>
    %3 = vector.shape_cast %2 : vector<1x8x128xf32> to vector<8x128xf32>
    %c0_4 = arith.constant 0 : index
    %4 = memref.load %arg5[%c0_4] : memref<1xf32, #tpu.memory_space<smem>>
    %5 = vector.broadcast %4 : f32 to vector<8x128xf32>
    %c0_5 = arith.constant 0 : index
    %6 = memref.load %arg2[%c0_5] : memref<32xf32, #tpu.memory_space<smem>>
    %7 = vector.broadcast %6 : f32 to vector<8x128xf32>
    %8 = arith.mulf %7, %1 : vector<8x128xf32>
    %c1_6 = arith.constant 1 : index
    %9 = memref.load %arg2[%c1_6] : memref<32xf32, #tpu.memory_space<smem>>
    %10 = vector.broadcast %9 : f32 to vector<8x128xf32>
    %11 = arith.mulf %10, %3 : vector<8x128xf32>
    %12 = arith.addf %8, %11 : vector<8x128xf32>
    %c0_7 = arith.constant 0 : index
    %13 = memref.load %arg3[%c0_7] : memref<16xf32, #tpu.memory_space<smem>>
    %14 = vector.broadcast %13 : f32 to vector<8x128xf32>
    %15 = arith.addf %12, %14 : vector<8x128xf32>
    %cst = arith.constant 0.000000e+00 : f32
    %16 = vector.broadcast %cst : f32 to vector<8x128xf32>
    %17 = arith.maximumf %15, %16 : vector<8x128xf32>
    %c0_8 = arith.constant 0 : index
    %18 = memref.load %arg4[%c0_8] : memref<16xf32, #tpu.memory_space<smem>>
    %19 = vector.broadcast %18 : f32 to vector<8x128xf32>
    %20 = arith.mulf %19, %17 : vector<8x128xf32>
    %21 = arith.addf %5, %20 : vector<8x128xf32>
    %c2 = arith.constant 2 : index
    %22 = memref.load %arg2[%c2] : memref<32xf32, #tpu.memory_space<smem>>
    %23 = vector.broadcast %22 : f32 to vector<8x128xf32>
    %24 = arith.mulf %23, %1 : vector<8x128xf32>
    %c3 = arith.constant 3 : index
    %25 = memref.load %arg2[%c3] : memref<32xf32, #tpu.memory_space<smem>>
    %26 = vector.broadcast %25 : f32 to vector<8x128xf32>
    %27 = arith.mulf %26, %3 : vector<8x128xf32>
    %28 = arith.addf %24, %27 : vector<8x128xf32>
    %c1_9 = arith.constant 1 : index
    %29 = memref.load %arg3[%c1_9] : memref<16xf32, #tpu.memory_space<smem>>
    %30 = vector.broadcast %29 : f32 to vector<8x128xf32>
    %31 = arith.addf %28, %30 : vector<8x128xf32>
    %cst_10 = arith.constant 0.000000e+00 : f32
    %32 = vector.broadcast %cst_10 : f32 to vector<8x128xf32>
    %33 = arith.maximumf %31, %32 : vector<8x128xf32>
    %c1_11 = arith.constant 1 : index
    %34 = memref.load %arg4[%c1_11] : memref<16xf32, #tpu.memory_space<smem>>
    %35 = vector.broadcast %34 : f32 to vector<8x128xf32>
    %36 = arith.mulf %35, %33 : vector<8x128xf32>
    %37 = arith.addf %21, %36 : vector<8x128xf32>
    %c4 = arith.constant 4 : index
    %38 = memref.load %arg2[%c4] : memref<32xf32, #tpu.memory_space<smem>>
    %39 = vector.broadcast %38 : f32 to vector<8x128xf32>
    %40 = arith.mulf %39, %1 : vector<8x128xf32>
    %c5 = arith.constant 5 : index
    %41 = memref.load %arg2[%c5] : memref<32xf32, #tpu.memory_space<smem>>
    %42 = vector.broadcast %41 : f32 to vector<8x128xf32>
    %43 = arith.mulf %42, %3 : vector<8x128xf32>
    %44 = arith.addf %40, %43 : vector<8x128xf32>
    %c2_12 = arith.constant 2 : index
    %45 = memref.load %arg3[%c2_12] : memref<16xf32, #tpu.memory_space<smem>>
    %46 = vector.broadcast %45 : f32 to vector<8x128xf32>
    %47 = arith.addf %44, %46 : vector<8x128xf32>
    %cst_13 = arith.constant 0.000000e+00 : f32
    %48 = vector.broadcast %cst_13 : f32 to vector<8x128xf32>
    %49 = arith.maximumf %47, %48 : vector<8x128xf32>
    %c2_14 = arith.constant 2 : index
    %50 = memref.load %arg4[%c2_14] : memref<16xf32, #tpu.memory_space<smem>>
    %51 = vector.broadcast %50 : f32 to vector<8x128xf32>
    %52 = arith.mulf %51, %49 : vector<8x128xf32>
    %53 = arith.addf %37, %52 : vector<8x128xf32>
    %c6 = arith.constant 6 : index
    %54 = memref.load %arg2[%c6] : memref<32xf32, #tpu.memory_space<smem>>
    %55 = vector.broadcast %54 : f32 to vector<8x128xf32>
    %56 = arith.mulf %55, %1 : vector<8x128xf32>
    %c7 = arith.constant 7 : index
    %57 = memref.load %arg2[%c7] : memref<32xf32, #tpu.memory_space<smem>>
    %58 = vector.broadcast %57 : f32 to vector<8x128xf32>
    %59 = arith.mulf %58, %3 : vector<8x128xf32>
    %60 = arith.addf %56, %59 : vector<8x128xf32>
    %c3_15 = arith.constant 3 : index
    %61 = memref.load %arg3[%c3_15] : memref<16xf32, #tpu.memory_space<smem>>
    %62 = vector.broadcast %61 : f32 to vector<8x128xf32>
    %63 = arith.addf %60, %62 : vector<8x128xf32>
    %cst_16 = arith.constant 0.000000e+00 : f32
    %64 = vector.broadcast %cst_16 : f32 to vector<8x128xf32>
    %65 = arith.maximumf %63, %64 : vector<8x128xf32>
    %c3_17 = arith.constant 3 : index
    %66 = memref.load %arg4[%c3_17] : memref<16xf32, #tpu.memory_space<smem>>
    %67 = vector.broadcast %66 : f32 to vector<8x128xf32>
    %68 = arith.mulf %67, %65 : vector<8x128xf32>
    %69 = arith.addf %53, %68 : vector<8x128xf32>
    %c8 = arith.constant 8 : index
    %70 = memref.load %arg2[%c8] : memref<32xf32, #tpu.memory_space<smem>>
    %71 = vector.broadcast %70 : f32 to vector<8x128xf32>
    %72 = arith.mulf %71, %1 : vector<8x128xf32>
    %c9 = arith.constant 9 : index
    %73 = memref.load %arg2[%c9] : memref<32xf32, #tpu.memory_space<smem>>
    %74 = vector.broadcast %73 : f32 to vector<8x128xf32>
    %75 = arith.mulf %74, %3 : vector<8x128xf32>
    %76 = arith.addf %72, %75 : vector<8x128xf32>
    %c4_18 = arith.constant 4 : index
    %77 = memref.load %arg3[%c4_18] : memref<16xf32, #tpu.memory_space<smem>>
    %78 = vector.broadcast %77 : f32 to vector<8x128xf32>
    %79 = arith.addf %76, %78 : vector<8x128xf32>
    %cst_19 = arith.constant 0.000000e+00 : f32
    %80 = vector.broadcast %cst_19 : f32 to vector<8x128xf32>
    %81 = arith.maximumf %79, %80 : vector<8x128xf32>
    %c4_20 = arith.constant 4 : index
    %82 = memref.load %arg4[%c4_20] : memref<16xf32, #tpu.memory_space<smem>>
    %83 = vector.broadcast %82 : f32 to vector<8x128xf32>
    %84 = arith.mulf %83, %81 : vector<8x128xf32>
    %85 = arith.addf %69, %84 : vector<8x128xf32>
    %c10 = arith.constant 10 : index
    %86 = memref.load %arg2[%c10] : memref<32xf32, #tpu.memory_space<smem>>
    %87 = vector.broadcast %86 : f32 to vector<8x128xf32>
    %88 = arith.mulf %87, %1 : vector<8x128xf32>
    %c11 = arith.constant 11 : index
    %89 = memref.load %arg2[%c11] : memref<32xf32, #tpu.memory_space<smem>>
    %90 = vector.broadcast %89 : f32 to vector<8x128xf32>
    %91 = arith.mulf %90, %3 : vector<8x128xf32>
    %92 = arith.addf %88, %91 : vector<8x128xf32>
    %c5_21 = arith.constant 5 : index
    %93 = memref.load %arg3[%c5_21] : memref<16xf32, #tpu.memory_space<smem>>
    %94 = vector.broadcast %93 : f32 to vector<8x128xf32>
    %95 = arith.addf %92, %94 : vector<8x128xf32>
    %cst_22 = arith.constant 0.000000e+00 : f32
    %96 = vector.broadcast %cst_22 : f32 to vector<8x128xf32>
    %97 = arith.maximumf %95, %96 : vector<8x128xf32>
    %c5_23 = arith.constant 5 : index
    %98 = memref.load %arg4[%c5_23] : memref<16xf32, #tpu.memory_space<smem>>
    %99 = vector.broadcast %98 : f32 to vector<8x128xf32>
    %100 = arith.mulf %99, %97 : vector<8x128xf32>
    %101 = arith.addf %85, %100 : vector<8x128xf32>
    %c12 = arith.constant 12 : index
    %102 = memref.load %arg2[%c12] : memref<32xf32, #tpu.memory_space<smem>>
    %103 = vector.broadcast %102 : f32 to vector<8x128xf32>
    %104 = arith.mulf %103, %1 : vector<8x128xf32>
    %c13 = arith.constant 13 : index
    %105 = memref.load %arg2[%c13] : memref<32xf32, #tpu.memory_space<smem>>
    %106 = vector.broadcast %105 : f32 to vector<8x128xf32>
    %107 = arith.mulf %106, %3 : vector<8x128xf32>
    %108 = arith.addf %104, %107 : vector<8x128xf32>
    %c6_24 = arith.constant 6 : index
    %109 = memref.load %arg3[%c6_24] : memref<16xf32, #tpu.memory_space<smem>>
    %110 = vector.broadcast %109 : f32 to vector<8x128xf32>
    %111 = arith.addf %108, %110 : vector<8x128xf32>
    %cst_25 = arith.constant 0.000000e+00 : f32
    %112 = vector.broadcast %cst_25 : f32 to vector<8x128xf32>
    %113 = arith.maximumf %111, %112 : vector<8x128xf32>
    %c6_26 = arith.constant 6 : index
    %114 = memref.load %arg4[%c6_26] : memref<16xf32, #tpu.memory_space<smem>>
    %115 = vector.broadcast %114 : f32 to vector<8x128xf32>
    %116 = arith.mulf %115, %113 : vector<8x128xf32>
    %117 = arith.addf %101, %116 : vector<8x128xf32>
    %c14 = arith.constant 14 : index
    %118 = memref.load %arg2[%c14] : memref<32xf32, #tpu.memory_space<smem>>
    %119 = vector.broadcast %118 : f32 to vector<8x128xf32>
    %120 = arith.mulf %119, %1 : vector<8x128xf32>
    %c15 = arith.constant 15 : index
    %121 = memref.load %arg2[%c15] : memref<32xf32, #tpu.memory_space<smem>>
    %122 = vector.broadcast %121 : f32 to vector<8x128xf32>
    %123 = arith.mulf %122, %3 : vector<8x128xf32>
    %124 = arith.addf %120, %123 : vector<8x128xf32>
    %c7_27 = arith.constant 7 : index
    %125 = memref.load %arg3[%c7_27] : memref<16xf32, #tpu.memory_space<smem>>
    %126 = vector.broadcast %125 : f32 to vector<8x128xf32>
    %127 = arith.addf %124, %126 : vector<8x128xf32>
    %cst_28 = arith.constant 0.000000e+00 : f32
    %128 = vector.broadcast %cst_28 : f32 to vector<8x128xf32>
    %129 = arith.maximumf %127, %128 : vector<8x128xf32>
    %c7_29 = arith.constant 7 : index
    %130 = memref.load %arg4[%c7_29] : memref<16xf32, #tpu.memory_space<smem>>
    %131 = vector.broadcast %130 : f32 to vector<8x128xf32>
    %132 = arith.mulf %131, %129 : vector<8x128xf32>
    %133 = arith.addf %117, %132 : vector<8x128xf32>
    %c16 = arith.constant 16 : index
    %134 = memref.load %arg2[%c16] : memref<32xf32, #tpu.memory_space<smem>>
    %135 = vector.broadcast %134 : f32 to vector<8x128xf32>
    %136 = arith.mulf %135, %1 : vector<8x128xf32>
    %c17 = arith.constant 17 : index
    %137 = memref.load %arg2[%c17] : memref<32xf32, #tpu.memory_space<smem>>
    %138 = vector.broadcast %137 : f32 to vector<8x128xf32>
    %139 = arith.mulf %138, %3 : vector<8x128xf32>
    %140 = arith.addf %136, %139 : vector<8x128xf32>
    %c8_30 = arith.constant 8 : index
    %141 = memref.load %arg3[%c8_30] : memref<16xf32, #tpu.memory_space<smem>>
    %142 = vector.broadcast %141 : f32 to vector<8x128xf32>
    %143 = arith.addf %140, %142 : vector<8x128xf32>
    %cst_31 = arith.constant 0.000000e+00 : f32
    %144 = vector.broadcast %cst_31 : f32 to vector<8x128xf32>
    %145 = arith.maximumf %143, %144 : vector<8x128xf32>
    %c8_32 = arith.constant 8 : index
    %146 = memref.load %arg4[%c8_32] : memref<16xf32, #tpu.memory_space<smem>>
    %147 = vector.broadcast %146 : f32 to vector<8x128xf32>
    %148 = arith.mulf %147, %145 : vector<8x128xf32>
    %149 = arith.addf %133, %148 : vector<8x128xf32>
    %c18 = arith.constant 18 : index
    %150 = memref.load %arg2[%c18] : memref<32xf32, #tpu.memory_space<smem>>
    %151 = vector.broadcast %150 : f32 to vector<8x128xf32>
    %152 = arith.mulf %151, %1 : vector<8x128xf32>
    %c19 = arith.constant 19 : index
    %153 = memref.load %arg2[%c19] : memref<32xf32, #tpu.memory_space<smem>>
    %154 = vector.broadcast %153 : f32 to vector<8x128xf32>
    %155 = arith.mulf %154, %3 : vector<8x128xf32>
    %156 = arith.addf %152, %155 : vector<8x128xf32>
    %c9_33 = arith.constant 9 : index
    %157 = memref.load %arg3[%c9_33] : memref<16xf32, #tpu.memory_space<smem>>
    %158 = vector.broadcast %157 : f32 to vector<8x128xf32>
    %159 = arith.addf %156, %158 : vector<8x128xf32>
    %cst_34 = arith.constant 0.000000e+00 : f32
    %160 = vector.broadcast %cst_34 : f32 to vector<8x128xf32>
    %161 = arith.maximumf %159, %160 : vector<8x128xf32>
    %c9_35 = arith.constant 9 : index
    %162 = memref.load %arg4[%c9_35] : memref<16xf32, #tpu.memory_space<smem>>
    %163 = vector.broadcast %162 : f32 to vector<8x128xf32>
    %164 = arith.mulf %163, %161 : vector<8x128xf32>
    %165 = arith.addf %149, %164 : vector<8x128xf32>
    %c20 = arith.constant 20 : index
    %166 = memref.load %arg2[%c20] : memref<32xf32, #tpu.memory_space<smem>>
    %167 = vector.broadcast %166 : f32 to vector<8x128xf32>
    %168 = arith.mulf %167, %1 : vector<8x128xf32>
    %c21 = arith.constant 21 : index
    %169 = memref.load %arg2[%c21] : memref<32xf32, #tpu.memory_space<smem>>
    %170 = vector.broadcast %169 : f32 to vector<8x128xf32>
    %171 = arith.mulf %170, %3 : vector<8x128xf32>
    %172 = arith.addf %168, %171 : vector<8x128xf32>
    %c10_36 = arith.constant 10 : index
    %173 = memref.load %arg3[%c10_36] : memref<16xf32, #tpu.memory_space<smem>>
    %174 = vector.broadcast %173 : f32 to vector<8x128xf32>
    %175 = arith.addf %172, %174 : vector<8x128xf32>
    %cst_37 = arith.constant 0.000000e+00 : f32
    %176 = vector.broadcast %cst_37 : f32 to vector<8x128xf32>
    %177 = arith.maximumf %175, %176 : vector<8x128xf32>
    %c10_38 = arith.constant 10 : index
    %178 = memref.load %arg4[%c10_38] : memref<16xf32, #tpu.memory_space<smem>>
    %179 = vector.broadcast %178 : f32 to vector<8x128xf32>
    %180 = arith.mulf %179, %177 : vector<8x128xf32>
    %181 = arith.addf %165, %180 : vector<8x128xf32>
    %c22 = arith.constant 22 : index
    %182 = memref.load %arg2[%c22] : memref<32xf32, #tpu.memory_space<smem>>
    %183 = vector.broadcast %182 : f32 to vector<8x128xf32>
    %184 = arith.mulf %183, %1 : vector<8x128xf32>
    %c23 = arith.constant 23 : index
    %185 = memref.load %arg2[%c23] : memref<32xf32, #tpu.memory_space<smem>>
    %186 = vector.broadcast %185 : f32 to vector<8x128xf32>
    %187 = arith.mulf %186, %3 : vector<8x128xf32>
    %188 = arith.addf %184, %187 : vector<8x128xf32>
    %c11_39 = arith.constant 11 : index
    %189 = memref.load %arg3[%c11_39] : memref<16xf32, #tpu.memory_space<smem>>
    %190 = vector.broadcast %189 : f32 to vector<8x128xf32>
    %191 = arith.addf %188, %190 : vector<8x128xf32>
    %cst_40 = arith.constant 0.000000e+00 : f32
    %192 = vector.broadcast %cst_40 : f32 to vector<8x128xf32>
    %193 = arith.maximumf %191, %192 : vector<8x128xf32>
    %c11_41 = arith.constant 11 : index
    %194 = memref.load %arg4[%c11_41] : memref<16xf32, #tpu.memory_space<smem>>
    %195 = vector.broadcast %194 : f32 to vector<8x128xf32>
    %196 = arith.mulf %195, %193 : vector<8x128xf32>
    %197 = arith.addf %181, %196 : vector<8x128xf32>
    %c24 = arith.constant 24 : index
    %198 = memref.load %arg2[%c24] : memref<32xf32, #tpu.memory_space<smem>>
    %199 = vector.broadcast %198 : f32 to vector<8x128xf32>
    %200 = arith.mulf %199, %1 : vector<8x128xf32>
    %c25 = arith.constant 25 : index
    %201 = memref.load %arg2[%c25] : memref<32xf32, #tpu.memory_space<smem>>
    %202 = vector.broadcast %201 : f32 to vector<8x128xf32>
    %203 = arith.mulf %202, %3 : vector<8x128xf32>
    %204 = arith.addf %200, %203 : vector<8x128xf32>
    %c12_42 = arith.constant 12 : index
    %205 = memref.load %arg3[%c12_42] : memref<16xf32, #tpu.memory_space<smem>>
    %206 = vector.broadcast %205 : f32 to vector<8x128xf32>
    %207 = arith.addf %204, %206 : vector<8x128xf32>
    %cst_43 = arith.constant 0.000000e+00 : f32
    %208 = vector.broadcast %cst_43 : f32 to vector<8x128xf32>
    %209 = arith.maximumf %207, %208 : vector<8x128xf32>
    %c12_44 = arith.constant 12 : index
    %210 = memref.load %arg4[%c12_44] : memref<16xf32, #tpu.memory_space<smem>>
    %211 = vector.broadcast %210 : f32 to vector<8x128xf32>
    %212 = arith.mulf %211, %209 : vector<8x128xf32>
    %213 = arith.addf %197, %212 : vector<8x128xf32>
    %c26 = arith.constant 26 : index
    %214 = memref.load %arg2[%c26] : memref<32xf32, #tpu.memory_space<smem>>
    %215 = vector.broadcast %214 : f32 to vector<8x128xf32>
    %216 = arith.mulf %215, %1 : vector<8x128xf32>
    %c27 = arith.constant 27 : index
    %217 = memref.load %arg2[%c27] : memref<32xf32, #tpu.memory_space<smem>>
    %218 = vector.broadcast %217 : f32 to vector<8x128xf32>
    %219 = arith.mulf %218, %3 : vector<8x128xf32>
    %220 = arith.addf %216, %219 : vector<8x128xf32>
    %c13_45 = arith.constant 13 : index
    %221 = memref.load %arg3[%c13_45] : memref<16xf32, #tpu.memory_space<smem>>
    %222 = vector.broadcast %221 : f32 to vector<8x128xf32>
    %223 = arith.addf %220, %222 : vector<8x128xf32>
    %cst_46 = arith.constant 0.000000e+00 : f32
    %224 = vector.broadcast %cst_46 : f32 to vector<8x128xf32>
    %225 = arith.maximumf %223, %224 : vector<8x128xf32>
    %c13_47 = arith.constant 13 : index
    %226 = memref.load %arg4[%c13_47] : memref<16xf32, #tpu.memory_space<smem>>
    %227 = vector.broadcast %226 : f32 to vector<8x128xf32>
    %228 = arith.mulf %227, %225 : vector<8x128xf32>
    %229 = arith.addf %213, %228 : vector<8x128xf32>
    %c28 = arith.constant 28 : index
    %230 = memref.load %arg2[%c28] : memref<32xf32, #tpu.memory_space<smem>>
    %231 = vector.broadcast %230 : f32 to vector<8x128xf32>
    %232 = arith.mulf %231, %1 : vector<8x128xf32>
    %c29 = arith.constant 29 : index
    %233 = memref.load %arg2[%c29] : memref<32xf32, #tpu.memory_space<smem>>
    %234 = vector.broadcast %233 : f32 to vector<8x128xf32>
    %235 = arith.mulf %234, %3 : vector<8x128xf32>
    %236 = arith.addf %232, %235 : vector<8x128xf32>
    %c14_48 = arith.constant 14 : index
    %237 = memref.load %arg3[%c14_48] : memref<16xf32, #tpu.memory_space<smem>>
    %238 = vector.broadcast %237 : f32 to vector<8x128xf32>
    %239 = arith.addf %236, %238 : vector<8x128xf32>
    %cst_49 = arith.constant 0.000000e+00 : f32
    %240 = vector.broadcast %cst_49 : f32 to vector<8x128xf32>
    %241 = arith.maximumf %239, %240 : vector<8x128xf32>
    %c14_50 = arith.constant 14 : index
    %242 = memref.load %arg4[%c14_50] : memref<16xf32, #tpu.memory_space<smem>>
    %243 = vector.broadcast %242 : f32 to vector<8x128xf32>
    %244 = arith.mulf %243, %241 : vector<8x128xf32>
    %245 = arith.addf %229, %244 : vector<8x128xf32>
    %c30 = arith.constant 30 : index
    %246 = memref.load %arg2[%c30] : memref<32xf32, #tpu.memory_space<smem>>
    %247 = vector.broadcast %246 : f32 to vector<8x128xf32>
    %248 = arith.mulf %247, %1 : vector<8x128xf32>
    %c31 = arith.constant 31 : index
    %249 = memref.load %arg2[%c31] : memref<32xf32, #tpu.memory_space<smem>>
    %250 = vector.broadcast %249 : f32 to vector<8x128xf32>
    %251 = arith.mulf %250, %3 : vector<8x128xf32>
    %252 = arith.addf %248, %251 : vector<8x128xf32>
    %c15_51 = arith.constant 15 : index
    %253 = memref.load %arg3[%c15_51] : memref<16xf32, #tpu.memory_space<smem>>
    %254 = vector.broadcast %253 : f32 to vector<8x128xf32>
    %255 = arith.addf %252, %254 : vector<8x128xf32>
    %cst_52 = arith.constant 0.000000e+00 : f32
    %256 = vector.broadcast %cst_52 : f32 to vector<8x128xf32>
    %257 = arith.maximumf %255, %256 : vector<8x128xf32>
    %c15_53 = arith.constant 15 : index
    %258 = memref.load %arg4[%c15_53] : memref<16xf32, #tpu.memory_space<smem>>
    %259 = vector.broadcast %258 : f32 to vector<8x128xf32>
    %260 = arith.mulf %259, %257 : vector<8x128xf32>
    %261 = arith.addf %245, %260 : vector<8x128xf32>
    %c0_54 = arith.constant 0 : index
    %c0_55 = arith.constant 0 : index
    %262 = vector.load %arg6[%c0_54, %c0_55] : memref<8x128xf32, #tpu.memory_space<vmem>>, vector<8x128xf32>
    tpu.vector_store %arg6[%c0_54, %c0_55], %261 {strides = array<i32>} : memref<8x128xf32, #tpu.memory_space<vmem>>, vector<8x128xf32>,
    return
  }
  func.func @transform_0(%arg0: i32) -> (i32, i32, i32) {
    %c0_i32 = arith.constant 0 : i32
    %c0_i32_0 = arith.constant 0 : i32
    %c0_i32_1 = arith.constant 0 : i32
    return %c0_i32, %arg0, %c0_i32_0 : i32, i32, i32
  }
  func.func @transform_1(%arg0: i32) -> i32 {
    %c0_i32 = arith.constant 0 : i32
    %c0_i32_0 = arith.constant 0 : i32
    return %c0_i32 : i32
  }
  func.func @transform_2(%arg0: i32) -> i32 {
    %c0_i32 = arith.constant 0 : i32
    %c0_i32_0 = arith.constant 0 : i32
    return %c0_i32 : i32
  }
  func.func @transform_3(%arg0: i32) -> i32 {
    %c0_i32 = arith.constant 0 : i32
    %c0_i32_0 = arith.constant 0 : i32
    return %c0_i32 : i32
  }
  func.func @transform_4(%arg0: i32) -> i32 {
    %c0_i32 = arith.constant 0 : i32
    %c0_i32_0 = arith.constant 0 : i32
    return %c0_i32 : i32
  }
  func.func @transform_5(%arg0: i32) -> (i32, i32) {
    %c0_i32 = arith.constant 0 : i32
    %c0_i32_0 = arith.constant 0 : i32
    return %arg0, %c0_i32 : i32, i32
  }
}

</mosaic_0001>

<bundles_post_ra>
// kernel: xornet_forward.1
= control target key start
LH: loop header
LB: loop body
LE: loop exit
PB: predicated region body
PF: predicated region fallthrough
CT: control target
= control target key end

     0   :  { %11 = vsyncpa [#allocation4], 0  ;;  %s588_s0 = inlined_call_operand.vmem [shape: f32[2,8,128], index: 0, kind: input, shape index: {}]   ;;  %s589_s1 = inlined_call_operand.vmem [shape: f32[32], index: 1, kind: input, shape index: {}]   ;;  %s590_s2 = inlined_call_operand.vmem [shape: f32[16], index: 2, kind: input, shape index: {}]   ;;  %s591_s3 = inlined_call_operand.vmem [shape: f32[16], index: 3, kind: input, shape index: {}]   ;;  %s592_s4 = inlined_call_operand.<no memory space> [shape: f32[1], index: 4, kind: input, shape index: {}]   ;;  %s593_s5 = inlined_call_operand.vmem [shape: f32[8,128], index: 5, kind: output, shape index: {}]  }
   0x1   :  { %12 = vsyncpa [#allocation6], 0  ;;  %s31_s20 = sshll.u32 %s590_s2, 4  ;;  %s21_s23 = sshll.u32 %s589_s1, 4  ;;  %s32_s20 = int_to_ptr.vmem [resolvable:$true] %s31_s20  ;;  %s22_s23 = int_to_ptr.vmem [resolvable:$true] %s21_s23 }
   0x2   :  { %s374_s24 = scalar_lea.vmem %s32_s20, 16  ;;  %p379_p1 = scmp.lt.s32.totalorder %s32_s20, %s32_s20 }
   0x3   :  { %p375_p0 = scmp.ne.s32.totalorder %s32_s20, %s374_s24  ;;  %p380_p2 = scmp.lt.s32.totalorder %s374_s24, %s374_s24 }
   0x5   :  { %p381_p3 = por %p380_p2, %p379_p1 }
   0x7   :  { %p382_p4 = pnand %p381_p3, %p375_p0 }
   0x9   :  { %385 = shalt.err (!%p382_p4)
}
   0xa   :  { %s414_s25 = smov [#allocation5]   ;;  %s386_s26 = scalar_lea.vmem %s22_s23, 16 }
   0xb   :  { %34 = dma.vmem_to_smem %s32_s20, 16, %s414_s25, [#allocation6]  }
   0xc   :  { %p387_p5 = scmp.ne.s32.totalorder %s22_s23, %s386_s26  ;;  %p391_p6 = scmp.lt.s32.totalorder %s22_s23, %s22_s23 }
   0xd   :  { %p392_p7 = scmp.lt.s32.totalorder %s386_s26, %s386_s26 }
   0xf   :  { %p393_p8 = por %p392_p7, %p391_p6 }
  0x11   :  { %p394_p9 = pnand %p393_p8, %p387_p5 }
  0x13   :  { %397 = shalt.err (!%p394_p9)
}
  0x14   :  { %s415_s2 = smov [#allocation3]   ;;  %s41_s28 = sshll.u32 %s591_s3, 4  ;;  %s42_s28 = int_to_ptr.vmem [resolvable:$true] %s41_s28 }
  0x15   :  { %24 = dma.vmem_to_smem %s22_s23, 16, %s415_s2, [#allocation4]  }
  0x16   :  { %s398_s29 = scalar_lea.vmem %s42_s28, 16  ;;  %p403_p11 = scmp.lt.s32.totalorder %s42_s28, %s42_s28 }
  0x17   :  { %p399_p10 = scmp.ne.s32.totalorder %s42_s28, %s398_s29  ;;  %p404_p12 = scmp.lt.s32.totalorder %s398_s29, %s398_s29 }
  0x19   :  { %p405_p13 = por %p404_p12, %p403_p11 }
  0x1b   :  { %p406_p0 = pnand %p405_p13, %p399_p10 }
  0x1d   :  { %409 = shalt.err (!%p406_p0)
}
  0x1e   :  { %s416_s30 = smov [#allocation7]  }
  0x1f   :  { %44 = dma.vmem_to_smem %s42_s28, 16, %s416_s30, [#allocation6]  }
  0x20   :  { %410 = dma.done.wait [#allocation4], 16  }
  0x21   :  { %411 = vsyncadd [#allocation4], 4294967280 }
  0x22   :  { %412 = dma.done.wait [#allocation6], 32  }
  0x23   :  { %413 = vsyncadd [#allocation6], 4294967264 }
  0x24   :  { %56 = sfence }
  0x25   :  { %s62_s6 = sld [smem:[#allocation3]]  ;;  %v461_v0 = vld [vmem:[%s588_s0] sm:$0xff]  ;;  %v466_v1 = vld [vmem:[%s588_s0 + $0x8] sm:$0xff]  ;;  %v61_v18 = vstv %s592_s4 }
  0x26   :  { %s310_s7 = sld [smem:[#allocation3 + $0x1]] }
  0x27   :  { %s69_s8 = sld [smem:[#allocation5]] }
  0x28   :  { %s456_s9 = sld [smem:[#allocation7]] }
  0x29   :  { %s311_s11 = sld [smem:[#allocation3 + $0x2]] }
  0x2a   :  { %s312_s14 = sld [smem:[#allocation3 + $0x3]] }
  0x2b   :  { %v63_v2 = vstv %s62_s6  ;;  %s313_s15 = sld [smem:[#allocation5 + $0x1]] }
  0x2c   :  { %v64_v3 = vmul.f32 %v63_v2, %v461_v0  ;;  %v66_v4 = vstv %s310_s7  ;;  %s469_s16 = sld [smem:[#allocation7 + $0x1]] }
  0x2d   :  { %v67_v5 = vmul.f32 %v466_v1, %v66_v4  ;;  %s315_s17 = sld [smem:[#allocation3 + $0x4]]  ;;  %v70_v6 = vstv %s69_s8 }
  0x2e   :  { %s316_s18 = sld [smem:[#allocation3 + $0x5]]  ;;  %v74_v13 = vstv %s456_s9 }
  0x2f   :  { %v68_v7 = vadd.f32 %v67_v5, %v64_v3  ;;  %v78_v8 = vstv %s311_s11  ;;  %s472_s19 = sld [smem:[#allocation5 + $0x2]] }
  0x30   :  { %v79_v9 = vmul.f32 %v78_v8, %v461_v0  ;;  %v81_v10 = vstv %s312_s14  ;;  %s475_s0 = sld [smem:[#allocation7 + $0x2]] }
  0x31   :  { %v71_v11 = vadd.f32 %v70_v6, %v68_v7  ;;  %v82_v12 = vmul.f32 %v466_v1, %v81_v10  ;;  %s319_s20 = sld [smem:[#allocation3 + $0x6]]  ;;  %v85_v14 = vstv %s313_s15 }
  0x32   :  { %s320_s21 = sld [smem:[#allocation3 + $0x7]]  ;;  %v89_v24 = vstv %s469_s16 }
  0x33   :  { %v72_v15 = vmax.f32 %v71_v11, 0.0  ;;  %v83_v16 = vadd.f32 %v82_v12, %v79_v9  ;;  %v93_v17 = vstv %s315_s17  ;;  %s479_s22 = sld [smem:[#allocation5 + $0x3]] }
  0x34   :  { %v94_v19 = vmul.f32 %v93_v17, %v461_v0  ;;  %v96_v20 = vstv %s316_s18  ;;  %s485_s25 = sld [smem:[#allocation7 + $0x3]] }
  0x35   :  { %v75_v21 = vmul.f32 %v74_v13, %v72_v15  ;;  %v86_v22 = vadd.f32 %v85_v14, %v83_v16  ;;  %v97_v23 = vmul.f32 %v466_v1, %v96_v20  ;;  %s323_s26 = sld [smem:[#allocation3 + $0x8]]  ;;  %v100_v25 = vstv %s472_s19 }
  0x36   :  { %s324_s2 = sld [smem:[#allocation3 + $0x9]]  ;;  %v104_v35 = vstv %s475_s0 }
  0x37   :  { %v76_v26 = vadd.f32 %v75_v21, %v61_v18  ;;  %v87_v27 = vmax.f32 %v86_v22, 0.0  ;;  %v98_v28 = vadd.f32 %v97_v23, %v94_v19  ;;  %v108_v29 = vstv %s319_s20  ;;  %s490_s4 = sld [smem:[#allocation5 + $0x4]] }
  0x38   :  { %v109_v30 = vmul.f32 %v108_v29, %v461_v0  ;;  %v111_v31 = vstv %s320_s21  ;;  %s493_s1 = sld [smem:[#allocation7 + $0x4]] }
  0x39   :  { %v90_v32 = vmul.f32 %v89_v24, %v87_v27  ;;  %v101_v33 = vadd.f32 %v100_v25, %v98_v28  ;;  %v112_v34 = vmul.f32 %v466_v1, %v111_v31  ;;  %s327_s27 = sld [smem:[#allocation3 + $0xa]]  ;;  %v115_v36 = vstv %s479_s22 }
  0x3a   :  { %s328_s28 = sld [smem:[#allocation3 + $0xb]]  ;;  %v119_v46 = vstv %s485_s25 }
  0x3b   :  { %v91_v37 = vadd.f32 %v90_v32, %v76_v26  ;;  %v102_v38 = vmax.f32 %v101_v33, 0.0  ;;  %v113_v39 = vadd.f32 %v112_v34, %v109_v30  ;;  %v123_v40 = vstv %s323_s26  ;;  %s498_s29 = sld [smem:[#allocation5 + $0x5]] }
  0x3c   :  { %v124_v41 = vmul.f32 %v123_v40, %v461_v0  ;;  %v126_v42 = vstv %s324_s2  ;;  %s501_s30 = sld [smem:[#allocation7 + $0x5]] }
  0x3d   :  { %v105_v43 = vmul.f32 %v104_v35, %v102_v38  ;;  %v116_v44 = vadd.f32 %v115_v36, %v113_v39  ;;  %v127_v45 = vmul.f32 %v466_v1, %v126_v42  ;;  %s331_s6 = sld [smem:[#allocation3 + $0xc]]  ;;  %v130_v47 = vstv %s490_s4 }
  0x3e   :  { %s332_s7 = sld [smem:[#allocation3 + $0xd]]  ;;  %v134_v57 = vstv %s493_s1 }
  0x3f   :  { %v106_v48 = vadd.f32 %v105_v43, %v91_v37  ;;  %v117_v49 = vmax.f32 %v116_v44, 0.0  ;;  %v128_v50 = vadd.f32 %v127_v45, %v124_v41  ;;  %v138_v51 = vstv %s327_s27  ;;  %s506_s8 = sld [smem:[#allocation5 + $0x6]] }
  0x40   :  { %v139_v52 = vmul.f32 %v138_v51, %v461_v0  ;;  %v141_v53 = vstv %s328_s28  ;;  %s509_s9 = sld [smem:[#allocation7 + $0x6]] }
  0x41   :  { %v120_v54 = vmul.f32 %v119_v46, %v117_v49  ;;  %v131_v55 = vadd.f32 %v130_v47, %v128_v50  ;;  %v142_v56 = vmul.f32 %v466_v1, %v141_v53  ;;  %s335_s3 = sld [smem:[#allocation3 + $0xe]]  ;;  %v145_v58 = vstv %s498_s29 }
  0x42   :  { %s336_s10 = sld [smem:[#allocation3 + $0xf]]  ;;  %v149_v6 = vstv %s501_s30 }
  0x43   :  { %v121_v59 = vadd.f32 %v120_v54, %v106_v48  ;;  %v132_v60 = vmax.f32 %v131_v55, 0.0  ;;  %v143_v61 = vadd.f32 %v142_v56, %v139_v52  ;;  %v153_v62 = vstv %s331_s6  ;;  %s514_s11 = sld [smem:[#allocation5 + $0x7]] }
  0x44   :  { %v154_v63 = vmul.f32 %v153_v62, %v461_v0  ;;  %v156_v2 = vstv %s332_s7  ;;  %s517_s12 = sld [smem:[#allocation7 + $0x7]] }
  0x45   :  { %v135_v3 = vmul.f32 %v134_v57, %v132_v60  ;;  %v146_v4 = vadd.f32 %v145_v58, %v143_v61  ;;  %v157_v5 = vmul.f32 %v466_v1, %v156_v2  ;;  %s339_s13 = sld [smem:[#allocation3 + $0x10]]  ;;  %v160_v7 = vstv %s506_s8 }
  0x46   :  { %s340_s14 = sld [smem:[#allocation3 + $0x11]]  ;;  %v164_v17 = vstv %s509_s9 }
  0x47   :  { %v136_v8 = vadd.f32 %v135_v3, %v121_v59  ;;  %v147_v9 = vmax.f32 %v146_v4, 0.0  ;;  %v158_v10 = vadd.f32 %v157_v5, %v154_v63  ;;  %v168_v11 = vstv %s335_s3  ;;  %s522_s15 = sld [smem:[#allocation5 + $0x8]] }
  0x48   :  { %v169_v12 = vmul.f32 %v168_v11, %v461_v0  ;;  %v171_v13 = vstv %s336_s10  ;;  %s525_s16 = sld [smem:[#allocation7 + $0x8]] }
  0x49   :  { %v150_v14 = vmul.f32 %v149_v6, %v147_v9  ;;  %v161_v15 = vadd.f32 %v160_v7, %v158_v10  ;;  %v172_v16 = vmul.f32 %v466_v1, %v171_v13  ;;  %s343_s17 = sld [smem:[#allocation3 + $0x12]]  ;;  %v175_v18 = vstv %s514_s11 }
  0x4a   :  { %s344_s18 = sld [smem:[#allocation3 + $0x13]]  ;;  %v179_v28 = vstv %s517_s12 }
  0x4b   :  { %v151_v19 = vadd.f32 %v150_v14, %v136_v8  ;;  %v162_v20 = vmax.f32 %v161_v15, 0.0  ;;  %v173_v21 = vadd.f32 %v172_v16, %v169_v12  ;;  %v183_v22 = vstv %s339_s13  ;;  %s530_s19 = sld [smem:[#allocation5 + $0x9]] }
  0x4c   :  { %v184_v23 = vmul.f32 %v183_v22, %v461_v0  ;;  %v186_v24 = vstv %s340_s14  ;;  %s533_s0 = sld [smem:[#allocation7 + $0x9]] }
  0x4d   :  { %v165_v25 = vmul.f32 %v164_v17, %v162_v20  ;;  %v176_v26 = vadd.f32 %v175_v18, %v173_v21  ;;  %v187_v27 = vmul.f32 %v466_v1, %v186_v24  ;;  %s347_s20 = sld [smem:[#allocation3 + $0x14]]  ;;  %v190_v29 = vstv %s522_s15 }
  0x4e   :  { %s348_s21 = sld [smem:[#allocation3 + $0x15]]  ;;  %v194_v39 = vstv %s525_s16 }
  0x4f   :  { %v166_v30 = vadd.f32 %v165_v25, %v151_v19  ;;  %v177_v31 = vmax.f32 %v176_v26, 0.0  ;;  %v188_v32 = vadd.f32 %v187_v27, %v184_v23  ;;  %v198_v33 = vstv %s343_s17  ;;  %s538_s22 = sld [smem:[#allocation5 + $0xa]] }
  0x50   :  { %v199_v34 = vmul.f32 %v198_v33, %v461_v0  ;;  %v201_v35 = vstv %s344_s18  ;;  %s541_s23 = sld [smem:[#allocation7 + $0xa]] }
  0x51   :  { %v180_v36 = vmul.f32 %v179_v28, %v177_v31  ;;  %v191_v37 = vadd.f32 %v190_v29, %v188_v32  ;;  %v202_v38 = vmul.f32 %v466_v1, %v201_v35  ;;  %s351_s24 = sld [smem:[#allocation3 + $0x16]]  ;;  %v205_v40 = vstv %s530_s19 }
  0x52   :  { %s352_s25 = sld [smem:[#allocation3 + $0x17]]  ;;  %v209_v50 = vstv %s533_s0 }
  0x53   :  { %v181_v41 = vadd.f32 %v180_v36, %v166_v30  ;;  %v192_v42 = vmax.f32 %v191_v37, 0.0  ;;  %v203_v43 = vadd.f32 %v202_v38, %v199_v34  ;;  %v213_v44 = vstv %s347_s20  ;;  %s546_s26 = sld [smem:[#allocation5 + $0xb]] }
  0x54   :  { %v214_v45 = vmul.f32 %v213_v44, %v461_v0  ;;  %v216_v46 = vstv %s348_s21  ;;  %s549_s2 = sld [smem:[#allocation7 + $0xb]] }
  0x55   :  { %v195_v47 = vmul.f32 %v194_v39, %v192_v42  ;;  %v206_v48 = vadd.f32 %v205_v40, %v203_v43  ;;  %v217_v49 = vmul.f32 %v466_v1, %v216_v46  ;;  %s355_s4 = sld [smem:[#allocation3 + $0x18]]  ;;  %v220_v51 = vstv %s538_s22 }
  0x56   :  { %s356_s1 = sld [smem:[#allocation3 + $0x19]]  ;;  %v224_v61 = vstv %s541_s23 }
  0x57   :  { %v196_v52 = vadd.f32 %v195_v47, %v181_v41  ;;  %v207_v53 = vmax.f32 %v206_v48, 0.0  ;;  %v218_v54 = vadd.f32 %v217_v49, %v214_v45  ;;  %v228_v55 = vstv %s351_s24  ;;  %s554_s27 = sld [smem:[#allocation5 + $0xc]] }
  0x58   :  { %v229_v56 = vmul.f32 %v228_v55, %v461_v0  ;;  %v231_v57 = vstv %s352_s25  ;;  %s557_s28 = sld [smem:[#allocation7 + $0xc]] }
  0x59   :  { %v210_v58 = vmul.f32 %v209_v50, %v207_v53  ;;  %v221_v59 = vadd.f32 %v220_v51, %v218_v54  ;;  %v232_v60 = vmul.f32 %v466_v1, %v231_v57  ;;  %s359_s29 = sld [smem:[#allocation3 + $0x1a]]  ;;  %v235_v62 = vstv %s546_s26 }
  0x5a   :  { %s360_s30 = sld [smem:[#allocation3 + $0x1b]]  ;;  %v239_v10 = vstv %s549_s2 }
  0x5b   :  { %v211_v63 = vadd.f32 %v210_v58, %v196_v52  ;;  %v222_v2 = vmax.f32 %v221_v59, 0.0  ;;  %v233_v3 = vadd.f32 %v232_v60, %v229_v56  ;;  %v243_v4 = vstv %s355_s4  ;;  %s562_s6 = sld [smem:[#allocation5 + $0xd]] }
  0x5c   :  { %v244_v5 = vmul.f32 %v243_v4, %v461_v0  ;;  %v246_v6 = vstv %s356_s1  ;;  %s565_s7 = sld [smem:[#allocation7 + $0xd]] }
  0x5d   :  { %v225_v7 = vmul.f32 %v224_v61, %v222_v2  ;;  %v236_v8 = vadd.f32 %v235_v62, %v233_v3  ;;  %v247_v9 = vmul.f32 %v466_v1, %v246_v6  ;;  %s363_s8 = sld [smem:[#allocation3 + $0x1c]]  ;;  %v250_v11 = vstv %s554_s27 }
  0x5e   :  { %s364_s9 = sld [smem:[#allocation3 + $0x1d]]  ;;  %v254_v21 = vstv %s557_s28 }
  0x5f   :  { %v226_v12 = vadd.f32 %v225_v7, %v211_v63  ;;  %v237_v13 = vmax.f32 %v236_v8, 0.0  ;;  %v248_v14 = vadd.f32 %v247_v9, %v244_v5  ;;  %v258_v15 = vstv %s359_s29  ;;  %s570_s3 = sld [smem:[#allocation5 + $0xe]] }
  0x60   :  { %v259_v16 = vmul.f32 %v258_v15, %v461_v0  ;;  %v261_v17 = vstv %s360_s30  ;;  %s573_s10 = sld [smem:[#allocation7 + $0xe]] }
  0x61   :  { %v240_v18 = vmul.f32 %v239_v10, %v237_v13  ;;  %v251_v19 = vadd.f32 %v250_v11, %v248_v14  ;;  %v262_v20 = vmul.f32 %v466_v1, %v261_v17  ;;  %s367_s11 = sld [smem:[#allocation3 + $0x1e]]  ;;  %v265_v22 = vstv %s562_s6 }
  0x62   :  { %s368_s12 = sld [smem:[#allocation3 + $0x1f]]  ;;  %v269_v32 = vstv %s565_s7 }
  0x63   :  { %v241_v23 = vadd.f32 %v240_v18, %v226_v12  ;;  %v252_v24 = vmax.f32 %v251_v19, 0.0  ;;  %v263_v25 = vadd.f32 %v262_v20, %v259_v16  ;;  %v273_v26 = vstv %s363_s8  ;;  %s369_s13 = sld [smem:[#allocation5 + $0xf]] }
  0x64   :  { %v274_v27 = vmul.f32 %v273_v26, %v461_v0  ;;  %v276_v28 = vstv %s364_s9  ;;  %s370_s14 = sld [smem:[#allocation7 + $0xf]] }
  0x65   :  { %v255_v29 = vmul.f32 %v254_v21, %v252_v24  ;;  %v266_v30 = vadd.f32 %v265_v22, %v263_v25  ;;  %v277_v31 = vmul.f32 %v466_v1, %v276_v28  ;;  %v280_v33 = vstv %s570_s3 }
  0x66   :  { %v284_v43 = vstv %s573_s10 }
  0x67   :  { %v256_v34 = vadd.f32 %v255_v29, %v241_v23  ;;  %v267_v35 = vmax.f32 %v266_v30, 0.0  ;;  %v278_v36 = vadd.f32 %v277_v31, %v274_v27  ;;  %v288_v37 = vstv %s367_s11 }
  0x68   :  { %v289_v38 = vmul.f32 %v288_v37, %v461_v0  ;;  %v291_v39 = vstv %s368_s12 }
  0x69   :  { %v270_v40 = vmul.f32 %v269_v32, %v267_v35  ;;  %v281_v41 = vadd.f32 %v280_v33, %v278_v36  ;;  %v292_v42 = vmul.f32 %v466_v1, %v291_v39  ;;  %v295_v44 = vstv %s369_s13 }
  0x6a   :  { %v299_v50 = vstv %s370_s14 }
  0x6b   :  { %v271_v45 = vadd.f32 %v270_v40, %v256_v34  ;;  %v282_v46 = vmax.f32 %v281_v41, 0.0  ;;  %v293_v47 = vadd.f32 %v292_v42, %v289_v38 }
  0x6d   :  { %v285_v48 = vmul.f32 %v284_v43, %v282_v46  ;;  %v296_v49 = vadd.f32 %v295_v44, %v293_v47 }
  0x6f   :  { %v286_v51 = vadd.f32 %v285_v48, %v271_v45  ;;  %v297_v52 = vmax.f32 %v296_v49, 0.0 }
  0x71   :  { %v300_v53 = vmul.f32 %v299_v50, %v297_v52 }
  0x73   :  { %v301_v54 = vadd.f32 %v300_v53, %v286_v51 }
  0x75   :  { %302 = vst [vmem:[%s593_s5] sm:$0xff] %v301_v54 }
  0x76   :  { %307 = vsyncpa [#allocation4], 1 }
  0x77   :  { %308 = vsyncpa [#allocation6], 1 }

</bundles_post_ra>
